<compile_context>
chip_gen: v6e
topology: v6e:2x2x1
jax: 0.10.0
libtpu: 0.0.40
codegen_flags: <defaults>
</compile_context>

<pallas_src>
import jax
import jax.numpy as jnp
from jax.experimental import pallas as pl
from jax.experimental.pallas import tpu as pltpu


def _round_up(x, m):
    return (x + m - 1) // m * m


def stonksnet_kernel(x_ref, w1_ref, b1_ref, w2_ref, b2_ref, o_ref):
    # fc1 on the MXU: (TILE_B, size) @ (size, H_PAD) -> (TILE_B, H_PAD), f32 accumulate.
    h = jnp.dot(x_ref[...], w1_ref[...], preferred_element_type=jnp.float32)
    h = jnp.maximum(h + b1_ref[...], 0.0)               # ReLU(fc1); padded hidden cols stay 0

    # out layer also on the MXU (K = H_PAD = 8). The MXU slot is otherwise nearly idle,
    # so this keeps the VALU slot free for the elementwise epilogue on big tiles.
    y = jnp.dot(h.astype(w2_ref.dtype), w2_ref[...], preferred_element_type=jnp.float32)

    # ReLU + store. Output block's last dim == full array dim (no lane padding, no slice).
    o_ref[...] = jnp.maximum(y + b2_ref[...], 0.0).astype(o_ref.dtype)


def stonksnet_forward(x, w1, b1, w2, b2, *, tile_b=None):
    """x: (B, size); w1: (size, 5); b1: (5,)/(1,5); w2: (5, size); b2: (size,)/(1,size)."""
    B, size = x.shape
    hidden = w1.shape[1]
    dtype = x.dtype
    itemsize = jnp.dtype(dtype).itemsize

    # --- pad hidden 5 -> 8 (sublane multiple); zero pads => exact ReLU(0) == 0 ---
    h_pad = max(8, _round_up(hidden, 8))
    w1_p = jnp.zeros((size, h_pad), dtype).at[:, :hidden].set(w1.astype(dtype))
    b1_p = jnp.zeros((1, h_pad), dtype).at[:, :hidden].set(
        jnp.reshape(b1, (1, hidden)).astype(dtype))
    w2_p = jnp.zeros((h_pad, size), dtype).at[:hidden, :].set(w2.astype(dtype))
    b2_p = jnp.reshape(b2, (1, size)).astype(dtype)

    # --- generation-aware tile size + VMEM budget ---
    try:
        vmem_cap = int(pltpu.get_tpu_info().vmem_capacity_bytes)
    except Exception:
        vmem_cap = 64 << 20                           # conservative fallback (v7x per-TC)
    weight_bytes = (size * h_pad + h_pad + h_pad * size + size) * itemsize
    bytes_per_row = 2 * (size + size) * itemsize      # double-buffered x tile + out tile
    if tile_b is None:
        budget = int(vmem_cap * 0.65) - weight_bytes
        tile_b = max(8, min(1024, budget // bytes_per_row))
    tile_b = max(8, _round_up(int(tile_b), 8))        # sublane-safe even if user-supplied
    tile_b = min(tile_b, _round_up(B, 8))             # small batches -> single small tile

    # Ragged batch: no jnp.pad of x (that would be an extra full HBM read+write).
    # Rows are independent, so the last tile's out-of-bounds rows read unspecified data
    # and their output rows are dropped by Pallas. Do not add cross-row reductions here.
    n_tiles = pl.cdiv(B, tile_b)

    vmem_limit = min(vmem_cap,
                     max(int(vmem_cap * 0.7),
                         tile_b * bytes_per_row + weight_bytes + (4 << 20)))

    cost = pl.CostEstimate(
        flops=2 * B * size * h_pad + 2 * B * h_pad * size,
        transcendentals=0,
        bytes_accessed=2 * B * size * itemsize + weight_bytes,
    )

    out = pl.pallas_call(
        stonksnet_kernel,
        out_shape=jax.ShapeDtypeStruct((B, size), dtype),
        grid_spec=pltpu.PrefetchScalarGridSpec(
            num_scalar_prefetch=0,
            grid=(n_tiles,),
            in_specs=[
                pl.BlockSpec((tile_b, size), lambda i: (i, 0)),   # x: streamed batch tiles
                pl.BlockSpec((size, h_pad), lambda i: (0, 0)),    # w1: VMEM-resident
                pl.BlockSpec((1, h_pad), lambda i: (0, 0)),       # b1
                pl.BlockSpec((h_pad, size), lambda i: (0, 0)),    # w2
                pl.BlockSpec((1, size), lambda i: (0, 0)),        # b2
            ],
            out_specs=pl.BlockSpec((tile_b, size), lambda i: (i, 0)),
        ),
        compiler_params=pltpu.CompilerParams(
            # Batch tiles are independent -> shard across TCs on v7x.
            # (Verify in a trace that both TCs split the axis; if not, switch to CORE_PARALLEL.)
            dimension_semantics=("parallel",),
            vmem_limit_bytes=int(vmem_limit),
        ),
        cost_estimate=cost,
    )(x, w1_p, b1_p, w2_p, b2_p)
    return out                                       # no padding -> no post-call slice


def init_params(key, size, hidden=5, dtype=jnp.float32):
    """Deterministic init mimicking PyTorch nn.Linear default (U[-1/sqrt(fan_in), +])."""
    k1, k2, k3, k4 = jax.random.split(key, 4)
    bound1 = 1.0 / jnp.sqrt(size)
    bound2 = 1.0 / jnp.sqrt(hidden)
    # Stored transposed relative to PyTorch's (out_features, in_features).
    w1 = jax.random.uniform(k1, (size, hidden), dtype, -bound1, bound1)
    b1 = jax.random.uniform(k2, (1, hidden), dtype, -bound1, bound1)
    w2 = jax.random.uniform(k3, (hidden, size), dtype, -bound2, bound2)
    b2 = jax.random.uniform(k4, (1, size), dtype, -bound2, bound2)
    return w1, b1, w2, b2


def _reference(x, w1, b1, w2, b2):
    return jnp.maximum(jnp.maximum(x @ w1 + b1, 0.0) @ w2 + b2, 0.0)


if __name__ == "__main__":
    key = jax.random.PRNGKey(0)
    size = 32          # StonksNet(size=32)
    batch = 8

    kx, kp, kx2 = jax.random.split(key, 3)
    w1, b1, w2, b2 = init_params(kp, size)

    # Check 1: small batch, single grid step, auto tile sizing.
    x = jax.random.normal(kx, (batch, size), jnp.float32)
    out = jax.block_until_ready(stonksnet_forward(x, w1, b1, w2, b2))
    ref = _reference(x, w1, b1, w2, b2)
    assert out.shape == (batch, size)
    assert jnp.allclose(out, ref, atol=2e-5, rtol=2e-5)

    # Check 2: ragged (non-multiple-of-tile) batch with a small explicit tile ->
    # exercises multiple pipelined grid steps and the pad-free last partial tile.
    x2 = jax.random.normal(kx2, (20, size), jnp.float32)
    out2 = jax.block_until_ready(stonksnet_forward(x2, w1, b1, w2, b2, tile_b=8))
    ref2 = _reference(x2, w1, b1, w2, b2)
    assert out2.shape == (20, size)
    assert jnp.allclose(out2, ref2, atol=2e-5, rtol=2e-5)

    print("KERNEL_OK")
</pallas_src>

<mosaic_0001>
module attributes {stable_mosaic.version = 11 : i64} {
  func.func @stonksnet_kernel(%arg0: i32, %arg1: memref<8x32xf32, #tpu.memory_space<vmem>>, %arg2: memref<32x8xf32, #tpu.memory_space<vmem>>, %arg3: memref<1x8xf32, #tpu.memory_space<vmem>>, %arg4: memref<8x32xf32, #tpu.memory_space<vmem>>, %arg5: memref<1x32xf32, #tpu.memory_space<vmem>>, %arg6: memref<8x32xf32, #tpu.memory_space<vmem>>) attributes {dimension_semantics = [#tpu.dimension_semantics<parallel>], iteration_bounds = array<i64: 1>, scalar_prefetch = 0 : i64, scratch_operands = 0 : i64, tpu.core_type = #tpu.core_type<tc>, window_params = [{transform_indices = @transform_0, window_bounds = array<i64: 8, 32>}, {pipeline_mode = #tpu.pipeline_mode<synchronous>, transform_indices = @transform_1, window_bounds = array<i64: 32, 8>}, {pipeline_mode = #tpu.pipeline_mode<synchronous>, transform_indices = @transform_2, window_bounds = array<i64: 1, 8>}, {pipeline_mode = #tpu.pipeline_mode<synchronous>, transform_indices = @transform_3, window_bounds = array<i64: 8, 32>}, {pipeline_mode = #tpu.pipeline_mode<synchronous>, transform_indices = @transform_4, window_bounds = array<i64: 1, 32>}, {transform_indices = @transform_5, window_bounds = array<i64: 8, 32>}]} {
    %c0 = arith.constant 0 : index
    %c0_0 = arith.constant 0 : index
    %0 = vector.load %arg1[%c0, %c0_0] : memref<8x32xf32, #tpu.memory_space<vmem>>, vector<8x32xf32>
    %c0_1 = arith.constant 0 : index
    %c0_2 = arith.constant 0 : index
    %1 = vector.load %arg2[%c0_1, %c0_2] : memref<32x8xf32, #tpu.memory_space<vmem>>, vector<32x8xf32>
    %cst = arith.constant dense<0.000000e+00> : vector<8x8xf32>
    %2 = tpu.matmul %0, %1, %cst {dimension_numbers = #tpu.dot_dimension_numbers<[1], [0], [0], [1], [0, 0, 1, 1], [], []>} : vector<8x32xf32>, vector<32x8xf32>, vector<8x8xf32> -> vector<8x8xf32>
    %c0_3 = arith.constant 0 : index
    %c0_4 = arith.constant 0 : index
    %3 = vector.load %arg3[%c0_3, %c0_4] : memref<1x8xf32, #tpu.memory_space<vmem>>, vector<1x8xf32>
    %4 = vector.broadcast %3 : vector<1x8xf32> to vector<8x8xf32>
    %5 = arith.addf %2, %4 : vector<8x8xf32>
    %cst_5 = arith.constant 0.000000e+00 : f32
    %6 = vector.broadcast %cst_5 : f32 to vector<8x8xf32>
    %7 = arith.maximumf %5, %6 : vector<8x8xf32>
    %c0_6 = arith.constant 0 : index
    %c0_7 = arith.constant 0 : index
    %8 = vector.load %arg4[%c0_6, %c0_7] : memref<8x32xf32, #tpu.memory_space<vmem>>, vector<8x32xf32>
    %cst_8 = arith.constant dense<0.000000e+00> : vector<8x32xf32>
    %9 = tpu.matmul %7, %8, %cst_8 {dimension_numbers = #tpu.dot_dimension_numbers<[1], [0], [0], [1], [0, 0, 1, 1], [], []>} : vector<8x8xf32>, vector<8x32xf32>, vector<8x32xf32> -> vector<8x32xf32>
    %c0_9 = arith.constant 0 : index
    %c0_10 = arith.constant 0 : index
    %10 = vector.load %arg5[%c0_9, %c0_10] : memref<1x32xf32, #tpu.memory_space<vmem>>, vector<1x32xf32>
    %11 = vector.broadcast %10 : vector<1x32xf32> to vector<8x32xf32>
    %12 = arith.addf %9, %11 : vector<8x32xf32>
    %cst_11 = arith.constant 0.000000e+00 : f32
    %13 = vector.broadcast %cst_11 : f32 to vector<8x32xf32>
    %14 = arith.maximumf %12, %13 : vector<8x32xf32>
    %c0_12 = arith.constant 0 : index
    %c0_13 = arith.constant 0 : index
    %15 = vector.load %arg6[%c0_12, %c0_13] : memref<8x32xf32, #tpu.memory_space<vmem>>, vector<8x32xf32>
    tpu.vector_store %arg6[%c0_12, %c0_13], %14 {strides = array<i32>} : memref<8x32xf32, #tpu.memory_space<vmem>>, vector<8x32xf32>,
    return
  }
  func.func @transform_0(%arg0: i32) -> (i32, i32) {
    %c0_i32 = arith.constant 0 : i32
    %c0_i32_0 = arith.constant 0 : i32
    return %arg0, %c0_i32 : i32, i32
  }
  func.func @transform_1(%arg0: i32) -> (i32, i32) {
    %c0_i32 = arith.constant 0 : i32
    %c0_i32_0 = arith.constant 0 : i32
    %c0_i32_1 = arith.constant 0 : i32
    return %c0_i32, %c0_i32_0 : i32, i32
  }
  func.func @transform_2(%arg0: i32) -> (i32, i32) {
    %c0_i32 = arith.constant 0 : i32
    %c0_i32_0 = arith.constant 0 : i32
    %c0_i32_1 = arith.constant 0 : i32
    return %c0_i32, %c0_i32_0 : i32, i32
  }
  func.func @transform_3(%arg0: i32) -> (i32, i32) {
    %c0_i32 = arith.constant 0 : i32
    %c0_i32_0 = arith.constant 0 : i32
    %c0_i32_1 = arith.constant 0 : i32
    return %c0_i32, %c0_i32_0 : i32, i32
  }
  func.func @transform_4(%arg0: i32) -> (i32, i32) {
    %c0_i32 = arith.constant 0 : i32
    %c0_i32_0 = arith.constant 0 : i32
    %c0_i32_1 = arith.constant 0 : i32
    return %c0_i32, %c0_i32_0 : i32, i32
  }
  func.func @transform_5(%arg0: i32) -> (i32, i32) {
    %c0_i32 = arith.constant 0 : i32
    %c0_i32_0 = arith.constant 0 : i32
    return %arg0, %c0_i32 : i32, i32
  }
}

</mosaic_0001>

<bundles_post_ra>
// kernel: tpu_custom_call.1
= control target key start
LH: loop header
LB: loop body
LE: loop exit
PB: predicated region body
PF: predicated region fallthrough
CT: control target
= control target key end

     0   :  { %v258_v1 = vmov 0.0   ;;  %vm259_vm0 = vmmov 0   ;;  %s320_s0 = inlined_call_operand.vmem [shape: f32[8,32], index: 0, kind: input, shape index: {}]   ;;  %s321_s1 = inlined_call_operand.vmem [shape: f32[32,8], index: 1, kind: input, shape index: {}]   ;;  %s322_s2 = inlined_call_operand.vmem [shape: f32[1,8], index: 2, kind: input, shape index: {}]   ;;  %s323_s3 = inlined_call_operand.vmem [shape: f32[8,32], index: 3, kind: input, shape index: {}]   ;;  %s324_s4 = inlined_call_operand.vmem [shape: f32[1,32], index: 4, kind: input, shape index: {}]   ;;  %s325_s5 = inlined_call_operand.hbm [shape: f32[8,32], index: 5, kind: output, shape index: {}]  }
   0x1   :  { %v25_v0 = vld [vmem:[%s321_s1 + $0x18] sm:$0xff]  ;;  %217 = vmatprep.subr.mxu0 %v258_v1  ;;  %v24_v2 = vld [vmem:[%s321_s1 + $0x10] sm:$0xff]  ;;  %225 = vmatprep.mubr.msk.f32.mxu0 %vm259_vm0, %v258_v1 }
   0x2   :  { %218 = vmatpush3.msra.mxu0 %v25_v0  ;;  %228 = vmatprep.subr.mxu1 %v258_v1 }
   0x3   :  { %10 = vsyncpa [#allocation3], 0  ;;  %219 = vmatprep.subr.mxu0 %v258_v1  ;;  %v23_v3 = vld [vmem:[%s321_s1 + $0x8] sm:$0xff]  ;;  %230 = vmatprep.mubr.msk.f32.mxu1 %vm259_vm0, %v258_v1  ;;  %v22_v4 = vld [vmem:[%s321_s1] sm:$0xff]  ;;  %vm33_vm1 = vcmask 261120   ;;  %vm116_vm2 = vcmask 64512  }
   0x4   :  { %220 = vmatpush3.msra.mxu0 %v24_v2  ;;  %v21_v5 = vld [vmem:[%s320_s0] sm:$0xff]  ;;  %s260_s7 = smov [#allocation2]  }
   0x5   :  { %221 = vmatprep.subr.mxu0 %v258_v1  ;;  %v108_v6 = vld [vmem:[%s323_s3] sm:$0xff]  ;;  %s198_s8 = sshll.u32 %s260_s7, 4  ;;  %s199_s8 = int_to_ptr.vmem [resolvable:$true] %s198_s8 }
   0x6   :  { %222 = vmatpush3.msra.mxu0 %v23_v3  ;;  %229 = vmatpush3.msra.mxu1 %v108_v6  ;;  %v206_v7 = vld [vmem:[%s322_s2] ss:$0 sm:$0xff]  ;;  %s236_s2 = scalar_lea.vmem %s199_s8, 128  ;;  %p241_p1 = scmp.lt.s32.totalorder %s199_s8, %s199_s8 }
   0x7   :  { %223 = vmatprep.subr.mxu0 %v258_v1  ;;  %v208_v12 = vld [vmem:[%s324_s4] ss:$0 sm:$0xff]  ;;  %p237_p0 = scmp.ne.s32.totalorder %s199_s8, %s236_s2  ;;  %p242_p2 = scmp.lt.s32.totalorder %s236_s2, %s236_s2 }
   0x8   :  { %224 = vmatpush3.msra.mxu0 %v22_v4 }
   0x9   :  { %226 = vmatmul.mubr.msk.f32.vlgmr.msra.gmra.mxu0 %vm33_vm1, %v21_v5  ;;  %p243_p3 = por %p242_p2, %p241_p1 }
   0xb   :  { %p244_p4 = pnand %p243_p3, %p237_p0 }
  0xc9   :  { %v103_v8 = vpop.f32.mrf.mxu0 }
  0xca   :  { %v104_v9 = vadd.f32 %v206_v7, %v103_v8 }
  0xcb   :  { %v227_v10 = vpop.f32.mrf.mxu0 }
  0xcc   :  { %v107_v11 = vmax.f32 %v104_v9, 0.0 }
  0xce   :  { %231 = vmatmul.mubr.msk.f32.vlgmr.msra.gmra.mxu1 %vm116_vm2, %v107_v11 }
 0x18e   :  { %v186_v13 = vpop.f32.mrf.mxu1 }
 0x18f   :  { %v187_v14 = vadd.f32 %v208_v12, %v186_v13 }
 0x190   :  { %v232_v15 = vpop.f32.mrf.mxu1 }
 0x191   :  { %v190_v16 = vmax.f32 %v187_v14, 0.0 }
 0x193   :  { %191 = vst.msk [vmem:[#allocation2] sm:$0xff] %vm33_vm1, %v190_v16 }
 0x194   :  { %247 = shalt.err (!%p244_p4)
}
 0x195   :  { %201 = dma.vmem_to_hbm [thread:$0]  %s199_s8, 128, %s325_s5, [#allocation3]  }
 0x196   :  { %256 = dma.done.wait [#allocation3], 128  }
 0x197   :  { %257 = vsyncadd [#allocation3], 4294967168 }
 0x198   :  { %205 = vsyncpa [#allocation3], 1 }

</bundles_post_ra>
